<compile_context>
chip_gen: v5e
topology: v5e:2x2
jax: 0.10.0
libtpu: 0.0.40
codegen_flags: <defaults>
</compile_context>

<pallas_src>
import jax
import jax.numpy as jnp
from jax.experimental import pallas as pl
from jax.experimental.pallas import tpu as pltpu

NEG_SLOPE = 0.1            # F.leaky_relu negative_slope
BN_EPS = 1e-5              # nn.BatchNorm1d default eps
SOFTPLUS_THRESHOLD = 20.0  # F.softplus default threshold
FUSE_TAPS_MAX_K = 256      # fuse the 3 conv taps into one matmul while 3*Cin <= this


# ---------------------------------------------------------------------------
# Kernel builder
# ---------------------------------------------------------------------------
def _make_kernel(B, L, c_in0, chans_out, out_feats, mxu_dtype):
    n_conv = len(chans_out)
    rows = B * L

    def _conv1d_k3(h, w_ref, mfirst, mlast, bias):
        """Conv1d(kernel=3, padding=1) on flat (B*L, Cin) -> f32 (B*L, Cout)."""
        h_prev = pltpu.roll(h, shift=1, axis=0) * mfirst          # x[l-1]
        h_next = pltpu.roll(h, shift=rows - 1, axis=0) * mlast    # x[l+1] (roll by -1)
        if len(w_ref.shape) == 2:
            # fused taps: single MXU push over a lane-concatenated bf16 operand.
            h_cat = jnp.concatenate([h_prev.astype(mxu_dtype),
                                     h.astype(mxu_dtype),
                                     h_next.astype(mxu_dtype)], axis=1)
            y = jnp.dot(h_cat, w_ref[...], preferred_element_type=jnp.float32)
        else:
            # 3-dot form: same MXU work, no (rows, 3*Cin) concat buffer.
            y = jnp.dot(h.astype(mxu_dtype), w_ref[1],
                        preferred_element_type=jnp.float32)
            y = y + jnp.dot(h_prev.astype(mxu_dtype), w_ref[0],
                            preferred_element_type=jnp.float32)
            y = y + jnp.dot(h_next.astype(mxu_dtype), w_ref[2],
                            preferred_element_type=jnp.float32)
        if bias is not None:
            y = y + bias
        return y

    def _bn_train(h, gamma, beta):
        """Train-mode BatchNorm1d: biased batch stats, one fused f32 reduction.

        E[x^2]-E[x]^2 in f32 is safe here: pre-BN channel means are O(std)
        (conv biases are dropped upstream), and the variance is clamped at 0.
        """
        c = h.shape[1]
        stats = jnp.sum(jnp.concatenate([h, h * h], axis=1), axis=0,
                        keepdims=True) * (1.0 / rows)
        m = stats[:, :c]
        v = jnp.maximum(stats[:, c:] - m * m, 0.0)
        return (h - m) * jax.lax.rsqrt(v + BN_EPS) * gamma + beta

    def kernel(x_ref, *rest):
        out_ref = rest[-1]
        conv_w = rest[:n_conv]
        lin_w_ref = rest[n_conv]
        vec_ref = rest[n_conv + 1]

        # On-chip NCL -> flat channel-last (B*L, C): channels in lanes, sequence
        # in sublanes.  Saves the wrapper-side transpose HBM round trip.
        h = jnp.transpose(x_ref[...], (0, 2, 1)).reshape(rows, c_in0)

        # Sequence-boundary masks from exact int32 position compares: zero the
        # rows a roll wrapped across a batch / sequence boundary.
        pos = jax.lax.broadcasted_iota(jnp.int32, (L, 1), 0)        # 0..L-1
        mfirst = jnp.tile((pos > 0).astype(jnp.float32), (B, 1))    # l != 0
        mlast = jnp.tile((pos < L - 1).astype(jnp.float32), (B, 1)) # l != L-1

        row = 0
        # all blocks except the last: conv -> bn(train stats) -> leaky_relu(0.1)
        for i in range(n_conv - 1):
            cout = chans_out[i]
            g = vec_ref[row:row + 1, :cout]
            be = vec_ref[row + 1:row + 2, :cout]
            row += 2
            # conv bias dropped here: train-mode BN cancels it exactly.
            h = _conv1d_k3(h, conv_w[i], mfirst, mlast, bias=None)
            h = _bn_train(h, g, be)
            h = jnp.where(h > 0, h, NEG_SLOPE * h)

        # last block: y = conv(h) + b; y = y + bn(y); relu
        cout = chans_out[-1]
        b = vec_ref[row:row + 1, :cout]
        g = vec_ref[row + 1:row + 2, :cout]
        be = vec_ref[row + 2:row + 3, :cout]
        row += 3
        y = _conv1d_k3(h, conv_w[-1], mfirst, mlast, bias=b)
        y = y + _bn_train(y, g, be)
        y = jnp.maximum(y, 0.0)

        # per-batch mean over the sequence
        c0 = y.shape[1]
        if L % 8 == 0:
            pooled = jnp.sum(y.reshape(B, L, c0), axis=1) * (1.0 / L)
        else:
            # tiling-unfriendly L: one MXU segment-sum instead of B strided slice
            # reductions (each of which would force a VMEM copy).
            b_of_row = jax.lax.broadcasted_iota(
                jnp.int32, (B, L, 1), 0).reshape(rows, 1)
            seg = (b_of_row == jax.lax.broadcasted_iota(
                jnp.int32, (1, B), 1)).astype(jnp.float32)
            pooled = jax.lax.dot_general(
                seg, y, (((0,), (0,)), ((), ())),
                preferred_element_type=jnp.float32) * (1.0 / L)

        # linear + softplus (threshold branch matches F.softplus; stable form)
        lb = vec_ref[row:row + 1, :out_feats]
        logits = jnp.dot(pooled.astype(mxu_dtype), lin_w_ref[...],
                         preferred_element_type=jnp.float32) + lb
        sp = jnp.maximum(logits, 0.0) + jnp.log(1.0 + jnp.exp(-jnp.abs(logits)))
        out_ref[...] = jnp.where(logits > SOFTPLUS_THRESHOLD, logits, sp)

    return kernel


# ---------------------------------------------------------------------------
# Wrapper (weight packing + pallas_call)
# ---------------------------------------------------------------------------
def _vmem_limit_bytes(resident_bytes):
    """Generation-aware VMEM budget: ~85% of physical (128 MiB v5e/v6e, 64 MiB v7x)."""
    phys = 64 * 1024 * 1024
    try:
        info = pltpu.get_tpu_info()
        phys = int(getattr(info, "vmem_capacity_bytes", phys)) or phys
    except Exception:   # query unavailable -> conservative default
        pass
    phys = min(phys, 128 * 1024 * 1024)
    cap = int(phys * 0.85)              # headroom for params, output, compiler scratch
    return int(min(max(4 * resident_bytes, 16 * 1024 * 1024), cap))


def cnn_forward(feat, params, hidden_feats, out_feats, mxu_dtype=jnp.bfloat16):
    B, C, L = feat.shape
    assert C == hidden_feats[0]
    rows = B * L
    n_conv = len(hidden_feats)
    chans_out = list(hidden_feats[1:]) + [hidden_feats[0]]
    max_c = max([C] + chans_out)

    x = feat.astype(jnp.float32)   # stays NCL; transposed on-chip

    # Conv weights: fused (3*Cin, Cout) pack while 3*Cin <= 256, else per-tap
    # (3, Cin, Cout) so the kernel never builds the big concat.  bf16 MXU operands.
    # TODO(synk): lane-pad Cin/Cout to 128 multiples when hidden_feats are mid-size
    # non-128 multiples so the lane concat becomes pure vreg placement.
    conv_ws = []
    for (w, b, g, be) in params["conv_bn"]:
        _, cin, cout = w.shape
        if 3 * cin <= FUSE_TAPS_MAX_K:
            conv_ws.append(w.reshape(3 * cin, cout).astype(mxu_dtype))
        else:
            conv_ws.append(w.astype(mxu_dtype))
    lin_w = params["linear_w"].astype(mxu_dtype)

    # Pack every tiny per-channel vector into ONE f32 buffer (one DMA):
    #   layers 0..n-2: [gamma, beta]        (conv bias cancelled by train-mode BN)
    #   last layer:    [bias, gamma, beta]
    #   final row:     linear bias
    width = max(max_c, out_feats)
    small = []
    for i, (w, b, g, be) in enumerate(params["conv_bn"]):
        small += ([g, be] if i < n_conv - 1 else [b, g, be])
    small.append(params["linear_b"])
    vecs = jnp.zeros((len(small), width), jnp.float32)
    for r, v in enumerate(small):
        v = jnp.asarray(v, jnp.float32).reshape(-1)
        vecs = vecs.at[r, :v.shape[0]].set(v)

    kernel = _make_kernel(B, L, C, chans_out, out_feats, mxu_dtype)
    vmem = pl.BlockSpec(memory_space=pltpu.MemorySpace.VMEM)
    inputs = [x] + conv_ws + [lin_w, vecs]

    # Resident-activation estimate: a few f32 (rows, C) copies + the bf16
    # lane-concatenated conv operand (when fused).
    mxu_bytes = jnp.dtype(mxu_dtype).itemsize
    resident = rows * max_c * (6 * 4 + 3 * mxu_bytes)
    # TODO(synk): once `resident` no longer fits the single-block VMEM budget,
    # switch to a gridded two-phase variant (row tiles; phase 0 conv + per-channel
    # sum/sumsq accumulation, phase 1 normalize+activate) and split the row tiles
    # across both v7x TensorCores with a cross-core BN stat reduction.

    return pl.pallas_call(
        kernel,
        out_shape=jax.ShapeDtypeStruct((B, out_feats), jnp.float32),
        in_specs=[vmem] * len(inputs),
        out_specs=vmem,
        compiler_params=pltpu.CompilerParams(
            vmem_limit_bytes=_vmem_limit_bytes(resident)),
    )(*inputs)


# ---------------------------------------------------------------------------
# Deterministic parameter init (shapes follow the PyTorch module __init__)
# ---------------------------------------------------------------------------
def init_params(key, hidden_feats, out_feats):
    chans_in = list(hidden_feats)
    chans_out = list(hidden_feats[1:]) + [hidden_feats[0]]
    params = {"conv_bn": []}
    for cin, cout in zip(chans_in, chans_out):
        key, k1, k2 = jax.random.split(key, 3)
        w = jax.random.normal(k1, (3, cin, cout), jnp.float32) * 0.1   # tap-major
        b = jax.random.normal(k2, (1, cout), jnp.float32) * 0.1
        gamma = jnp.ones((1, cout), jnp.float32)   # nn.BatchNorm1d default weight
        beta = jnp.zeros((1, cout), jnp.float32)   # nn.BatchNorm1d default bias
        params["conv_bn"].append((w, b, gamma, beta))
    key, k1, k2 = jax.random.split(key, 3)
    params["linear_w"] = jax.random.normal(
        k1, (hidden_feats[0], out_feats), jnp.float32) * 0.1
    params["linear_b"] = jax.random.normal(k2, (1, out_feats), jnp.float32) * 0.1
    return params


# ---------------------------------------------------------------------------
# Pure-JAX reference (mirrors the PyTorch forward, full f32) for a sanity check
# ---------------------------------------------------------------------------
def reference(feat, params):
    def conv(x, w, b):  # x: (B, Cin, L), w: (3, Cin, Cout)
        xp = jnp.pad(x, ((0, 0), (0, 0), (1, 1)))
        y = (jnp.einsum("bcl,cd->bdl", xp[:, :, 0:-2], w[0])
             + jnp.einsum("bcl,cd->bdl", xp[:, :, 1:-1], w[1])
             + jnp.einsum("bcl,cd->bdl", xp[:, :, 2:], w[2]))
        return y + b.reshape(1, -1, 1)

    def bn(x, g, be):
        m = jnp.mean(x, axis=(0, 2), keepdims=True)
        v = jnp.mean((x - m) ** 2, axis=(0, 2), keepdims=True)
        return (x - m) / jnp.sqrt(v + BN_EPS) * g.reshape(1, -1, 1) + be.reshape(1, -1, 1)

    x = feat
    cb = params["conv_bn"]
    for w, b, g, be in cb[:-1]:
        x = conv(x, w, b)
        x = bn(x, g, be)
        x = jnp.where(x > 0, x, NEG_SLOPE * x)
    w, b, g, be = cb[-1]
    x = conv(x, w, b)
    x = x + bn(x, g, be)
    x = jnp.maximum(x, 0.0)
    x = jnp.mean(x, axis=2)
    o = x @ params["linear_w"] + params["linear_b"]
    return jnp.where(o > SOFTPLUS_THRESHOLD, o,
                     jnp.log1p(jnp.exp(jnp.minimum(o, SOFTPLUS_THRESHOLD))))


if __name__ == "__main__":
    hidden_feats = [8, 16]  # Conv1d(8,16)+BN(16), Conv1d(16,8)+BN(8), Linear(8,4)
    out_feats = 4
    B, L = 2, 16

    key = jax.random.PRNGKey(0)
    kx, kp = jax.random.split(key)
    feat = jax.random.normal(kx, (B, hidden_feats[0], L), jnp.float32)
    params = init_params(kp, hidden_feats, out_feats)

    out = cnn_forward(feat, params, hidden_feats, out_feats)
    out = jax.block_until_ready(out)

    ref = reference(feat, params)
    assert out.shape == (B, out_feats)
    # bf16 MXU operands in the kernel vs. a pure-f32 reference -> relaxed tolerance.
    assert jnp.allclose(out, ref, atol=2e-2, rtol=2e-2), (out, ref)
    print("KERNEL_OK")
</pallas_src>

<mosaic_0001>
module attributes {stable_mosaic.version = 11 : i64} {
  func.func @kernel(%arg0: memref<2x8x16xf32, #tpu.memory_space<vmem>>, %arg1: memref<24x16xbf16, #tpu.memory_space<vmem>>, %arg2: memref<48x8xbf16, #tpu.memory_space<vmem>>, %arg3: memref<8x4xbf16, #tpu.memory_space<vmem>>, %arg4: memref<6x16xf32, #tpu.memory_space<vmem>>, %arg5: memref<2x4xf32, #tpu.memory_space<vmem>>) attributes {dimension_semantics = [], scalar_prefetch = 0 : i64, scratch_operands = 0 : i64, tpu.core_type = #tpu.core_type<tc>} {
    %c0 = arith.constant 0 : index
    %c0_0 = arith.constant 0 : index
    %c0_1 = arith.constant 0 : index
    %0 = vector.load %arg0[%c0, %c0_0, %c0_1] : memref<2x8x16xf32, #tpu.memory_space<vmem>>, vector<2x8x16xf32>
    %1 = tpu.transpose %0, [0, 2, 1] : vector<2x8x16xf32> -> vector<2x16x8xf32>
    %2 = vector.shape_cast %1 : vector<2x16x8xf32> to vector<32x8xf32>
    %3 = tpu.iota {dimensions = array<i32: 0>} : vector<16x1xi32>
    %c0_i32 = arith.constant 0 : i32
    %4 = vector.broadcast %c0_i32 : i32 to vector<16x1xi32>
    %5 = arith.cmpi sgt, %3, %4 : vector<16x1xi32>
    %6 = arith.extui %5 : vector<16x1xi1> to vector<16x1xi32>
    %7 = arith.sitofp %6 : vector<16x1xi32> to vector<16x1xf32>
    %8 = tpu.concatenate %7, %7 in 0 : vector<16x1xf32>, vector<16x1xf32> -> vector<32x1xf32>
    %c15_i32 = arith.constant 15 : i32
    %9 = vector.broadcast %c15_i32 : i32 to vector<16x1xi32>
    %10 = arith.cmpi slt, %3, %9 : vector<16x1xi32>
    %11 = arith.extui %10 : vector<16x1xi1> to vector<16x1xi32>
    %12 = arith.sitofp %11 : vector<16x1xi32> to vector<16x1xf32>
    %13 = tpu.concatenate %12, %12 in 0 : vector<16x1xf32>, vector<16x1xf32> -> vector<32x1xf32>
    %c0_2 = arith.constant 0 : index
    %c0_3 = arith.constant 0 : index
    %14 = vector.load %arg4[%c0_2, %c0_3] : memref<6x16xf32, #tpu.memory_space<vmem>>, vector<1x16xf32>
    %c1 = arith.constant 1 : index
    %c0_4 = arith.constant 0 : index
    %15 = vector.load %arg4[%c1, %c0_4] : memref<6x16xf32, #tpu.memory_space<vmem>>, vector<1x16xf32>
    %c1_i32 = arith.constant 1 : i32
    %16 = tpu.dynamic_rotate %2 by %c1_i32 dim 0 : vector<32x8xf32>, i32 -> vector<32x8xf32>
    %17 = vector.broadcast %8 : vector<32x1xf32> to vector<32x8xf32>
    %18 = arith.mulf %16, %17 : vector<32x8xf32>
    %c31_i32 = arith.constant 31 : i32
    %19 = tpu.dynamic_rotate %2 by %c31_i32 dim 0 : vector<32x8xf32>, i32 -> vector<32x8xf32>
    %20 = vector.broadcast %13 : vector<32x1xf32> to vector<32x8xf32>
    %21 = arith.mulf %19, %20 : vector<32x8xf32>
    %22 = arith.truncf %18 : vector<32x8xf32> to vector<32x8xbf16>
    %23 = arith.truncf %2 : vector<32x8xf32> to vector<32x8xbf16>
    %24 = arith.truncf %21 : vector<32x8xf32> to vector<32x8xbf16>
    %25 = tpu.concatenate %22, %23, %24 in 1 : vector<32x8xbf16>, vector<32x8xbf16>, vector<32x8xbf16> -> vector<32x24xbf16>
    %c0_5 = arith.constant 0 : index
    %c0_6 = arith.constant 0 : index
    %26 = vector.load %arg1[%c0_5, %c0_6] : memref<24x16xbf16, #tpu.memory_space<vmem>>, vector<24x16xbf16>
    %cst = arith.constant dense<0.000000e+00> : vector<32x16xf32>
    %27 = tpu.matmul %25, %26, %cst {dimension_numbers = #tpu.dot_dimension_numbers<[1], [0], [0], [1], [0, 0, 1, 1], [], []>} : vector<32x24xbf16>, vector<24x16xbf16>, vector<32x16xf32> -> vector<32x16xf32>
    %28 = arith.mulf %27, %27 : vector<32x16xf32>
    %29 = tpu.concatenate %27, %28 in 1 : vector<32x16xf32>, vector<32x16xf32> -> vector<32x32xf32>
    %cst_7 = arith.constant dense<0.000000e+00> : vector<32xf32>
    %30 = vector.multi_reduction <add>, %29, %cst_7 [0] : vector<32x32xf32> to vector<32xf32>
    %31 = vector.shape_cast %30 : vector<32xf32> to vector<1x32xf32>
    %cst_8 = arith.constant 3.125000e-02 : f32
    %32 = vector.broadcast %cst_8 : f32 to vector<1x32xf32>
    %33 = arith.mulf %31, %32 : vector<1x32xf32>
    %34 = vector.extract_strided_slice %33 {offsets = [0, 0], sizes = [1, 16], strides = [1, 1]} : vector<1x32xf32> to vector<1x16xf32>
    %35 = vector.extract_strided_slice %33 {offsets = [0, 16], sizes = [1, 16], strides = [1, 1]} : vector<1x32xf32> to vector<1x16xf32>
    %36 = arith.mulf %34, %34 : vector<1x16xf32>
    %37 = arith.subf %35, %36 : vector<1x16xf32>
    %cst_9 = arith.constant 0.000000e+00 : f32
    %38 = vector.broadcast %cst_9 : f32 to vector<1x16xf32>
    %39 = arith.maximumf %37, %38 : vector<1x16xf32>
    %40 = vector.broadcast %34 : vector<1x16xf32> to vector<32x16xf32>
    %41 = arith.subf %27, %40 : vector<32x16xf32>
    %cst_10 = arith.constant 9.99999974E-6 : f32
    %42 = vector.broadcast %cst_10 : f32 to vector<1x16xf32>
    %43 = arith.addf %39, %42 : vector<1x16xf32>
    %44 = math.rsqrt %43 : vector<1x16xf32>
    %45 = vector.broadcast %44 : vector<1x16xf32> to vector<32x16xf32>
    %46 = arith.mulf %41, %45 : vector<32x16xf32>
    %47 = vector.broadcast %14 : vector<1x16xf32> to vector<32x16xf32>
    %48 = arith.mulf %46, %47 : vector<32x16xf32>
    %49 = vector.broadcast %15 : vector<1x16xf32> to vector<32x16xf32>
    %50 = arith.addf %48, %49 : vector<32x16xf32>
    %cst_11 = arith.constant 0.000000e+00 : f32
    %51 = vector.broadcast %cst_11 : f32 to vector<32x16xf32>
    %52 = arith.cmpf ogt, %50, %51 : vector<32x16xf32>
    %cst_12 = arith.constant 1.000000e-01 : f32
    %53 = vector.broadcast %cst_12 : f32 to vector<32x16xf32>
    %54 = arith.mulf %53, %50 : vector<32x16xf32>
    %55 = arith.select %52, %50, %54 : vector<32x16xi1>, vector<32x16xf32>
    %c2 = arith.constant 2 : index
    %c0_13 = arith.constant 0 : index
    %56 = vector.load %arg4[%c2, %c0_13] : memref<6x16xf32, #tpu.memory_space<vmem>>, vector<1x8xf32>
    %c3 = arith.constant 3 : index
    %c0_14 = arith.constant 0 : index
    %57 = vector.load %arg4[%c3, %c0_14] : memref<6x16xf32, #tpu.memory_space<vmem>>, vector<1x8xf32>
    %c4 = arith.constant 4 : index
    %c0_15 = arith.constant 0 : index
    %58 = vector.load %arg4[%c4, %c0_15] : memref<6x16xf32, #tpu.memory_space<vmem>>, vector<1x8xf32>
    %c1_i32_16 = arith.constant 1 : i32
    %59 = tpu.dynamic_rotate %55 by %c1_i32_16 dim 0 : vector<32x16xf32>, i32 -> vector<32x16xf32>
    %60 = vector.broadcast %8 : vector<32x1xf32> to vector<32x16xf32>
    %61 = arith.mulf %59, %60 : vector<32x16xf32>
    %c31_i32_17 = arith.constant 31 : i32
    %62 = tpu.dynamic_rotate %55 by %c31_i32_17 dim 0 : vector<32x16xf32>, i32 -> vector<32x16xf32>
    %63 = vector.broadcast %13 : vector<32x1xf32> to vector<32x16xf32>
    %64 = arith.mulf %62, %63 : vector<32x16xf32>
    %65 = arith.truncf %61 : vector<32x16xf32> to vector<32x16xbf16>
    %66 = arith.truncf %55 : vector<32x16xf32> to vector<32x16xbf16>
    %67 = arith.truncf %64 : vector<32x16xf32> to vector<32x16xbf16>
    %68 = tpu.concatenate %65, %66, %67 in 1 : vector<32x16xbf16>, vector<32x16xbf16>, vector<32x16xbf16> -> vector<32x48xbf16>
    %c0_18 = arith.constant 0 : index
    %c0_19 = arith.constant 0 : index
    %69 = vector.load %arg2[%c0_18, %c0_19] : memref<48x8xbf16, #tpu.memory_space<vmem>>, vector<48x8xbf16>
    %cst_20 = arith.constant dense<0.000000e+00> : vector<32x8xf32>
    %70 = tpu.matmul %68, %69, %cst_20 {dimension_numbers = #tpu.dot_dimension_numbers<[1], [0], [0], [1], [0, 0, 1, 1], [], []>} : vector<32x48xbf16>, vector<48x8xbf16>, vector<32x8xf32> -> vector<32x8xf32>
    %71 = vector.broadcast %56 : vector<1x8xf32> to vector<32x8xf32>
    %72 = arith.addf %70, %71 : vector<32x8xf32>
    %73 = arith.mulf %72, %72 : vector<32x8xf32>
    %74 = tpu.concatenate %72, %73 in 1 : vector<32x8xf32>, vector<32x8xf32> -> vector<32x16xf32>
    %cst_21 = arith.constant dense<0.000000e+00> : vector<16xf32>
    %75 = vector.multi_reduction <add>, %74, %cst_21 [0] : vector<32x16xf32> to vector<16xf32>
    %76 = vector.shape_cast %75 : vector<16xf32> to vector<1x16xf32>
    %cst_22 = arith.constant 3.125000e-02 : f32
    %77 = vector.broadcast %cst_22 : f32 to vector<1x16xf32>
    %78 = arith.mulf %76, %77 : vector<1x16xf32>
    %79 = vector.extract_strided_slice %78 {offsets = [0, 0], sizes = [1, 8], strides = [1, 1]} : vector<1x16xf32> to vector<1x8xf32>
    %80 = vector.extract_strided_slice %78 {offsets = [0, 8], sizes = [1, 8], strides = [1, 1]} : vector<1x16xf32> to vector<1x8xf32>
    %81 = arith.mulf %79, %79 : vector<1x8xf32>
    %82 = arith.subf %80, %81 : vector<1x8xf32>
    %cst_23 = arith.constant 0.000000e+00 : f32
    %83 = vector.broadcast %cst_23 : f32 to vector<1x8xf32>
    %84 = arith.maximumf %82, %83 : vector<1x8xf32>
    %85 = vector.broadcast %79 : vector<1x8xf32> to vector<32x8xf32>
    %86 = arith.subf %72, %85 : vector<32x8xf32>
    %cst_24 = arith.constant 9.99999974E-6 : f32
    %87 = vector.broadcast %cst_24 : f32 to vector<1x8xf32>
    %88 = arith.addf %84, %87 : vector<1x8xf32>
    %89 = math.rsqrt %88 : vector<1x8xf32>
    %90 = vector.broadcast %89 : vector<1x8xf32> to vector<32x8xf32>
    %91 = arith.mulf %86, %90 : vector<32x8xf32>
    %92 = vector.broadcast %57 : vector<1x8xf32> to vector<32x8xf32>
    %93 = arith.mulf %91, %92 : vector<32x8xf32>
    %94 = vector.broadcast %58 : vector<1x8xf32> to vector<32x8xf32>
    %95 = arith.addf %93, %94 : vector<32x8xf32>
    %96 = arith.addf %72, %95 : vector<32x8xf32>
    %cst_25 = arith.constant 0.000000e+00 : f32
    %97 = vector.broadcast %cst_25 : f32 to vector<32x8xf32>
    %98 = arith.maximumf %96, %97 : vector<32x8xf32>
    %99 = vector.shape_cast %98 : vector<32x8xf32> to vector<2x16x8xf32>
    %cst_26 = arith.constant dense<0.000000e+00> : vector<2x8xf32>
    %100 = vector.multi_reduction <add>, %99, %cst_26 [1] : vector<2x16x8xf32> to vector<2x8xf32>
    %cst_27 = arith.constant 6.250000e-02 : f32
    %101 = vector.broadcast %cst_27 : f32 to vector<2x8xf32>
    %102 = arith.mulf %100, %101 : vector<2x8xf32>
    %c5 = arith.constant 5 : index
    %c0_28 = arith.constant 0 : index
    %103 = vector.load %arg4[%c5, %c0_28] : memref<6x16xf32, #tpu.memory_space<vmem>>, vector<1x4xf32>
    %104 = arith.truncf %102 : vector<2x8xf32> to vector<2x8xbf16>
    %c0_29 = arith.constant 0 : index
    %c0_30 = arith.constant 0 : index
    %105 = vector.load %arg3[%c0_29, %c0_30] : memref<8x4xbf16, #tpu.memory_space<vmem>>, vector<8x4xbf16>
    %cst_31 = arith.constant dense<0.000000e+00> : vector<2x4xf32>
    %106 = tpu.matmul %104, %105, %cst_31 {dimension_numbers = #tpu.dot_dimension_numbers<[1], [0], [0], [1], [0, 0, 1, 1], [], []>} : vector<2x8xbf16>, vector<8x4xbf16>, vector<2x4xf32> -> vector<2x4xf32>
    %107 = vector.broadcast %103 : vector<1x4xf32> to vector<2x4xf32>
    %108 = arith.addf %106, %107 : vector<2x4xf32>
    %cst_32 = arith.constant 0.000000e+00 : f32
    %109 = vector.broadcast %cst_32 : f32 to vector<2x4xf32>
    %110 = arith.maximumf %108, %109 : vector<2x4xf32>
    %111 = math.absf %108 : vector<2x4xf32>
    %cst_33 = arith.constant 0.000000e+00 : f32
    %112 = vector.broadcast %cst_33 : f32 to vector<2x4xf32>
    %113 = arith.subf %112, %111 : vector<2x4xf32>
    %114 = math.exp %113 : vector<2x4xf32>
    %cst_34 = arith.constant 1.000000e+00 : f32
    %115 = vector.broadcast %cst_34 : f32 to vector<2x4xf32>
    %116 = arith.addf %115, %114 : vector<2x4xf32>
    %117 = math.log %116 : vector<2x4xf32>
    %118 = arith.addf %110, %117 : vector<2x4xf32>
    %cst_35 = arith.constant 2.000000e+01 : f32
    %119 = vector.broadcast %cst_35 : f32 to vector<2x4xf32>
    %120 = arith.cmpf ogt, %108, %119 : vector<2x4xf32>
    %121 = arith.select %120, %108, %118 : vector<2x4xi1>, vector<2x4xf32>
    %c0_36 = arith.constant 0 : index
    %c0_37 = arith.constant 0 : index
    %122 = vector.load %arg5[%c0_36, %c0_37] : memref<2x4xf32, #tpu.memory_space<vmem>>, vector<2x4xf32>
    tpu.vector_store %arg5[%c0_36, %c0_37], %121 {strides = array<i32>} : memref<2x4xf32, #tpu.memory_space<vmem>>, vector<2x4xf32>,
    return
  }
}

</mosaic_0001>

<bundles_post_ra>
// kernel: tpu_custom_call.1
= control target key start
LH: loop header
LB: loop body
LE: loop exit
PB: predicated region body
PF: predicated region fallthrough
CT: control target
= control target key end

     0   :  { %v88_v1 = vlaneseq  ;;  %v739_v2 = vmov 0   ;;  %s966_s0 = inlined_call_operand.vmem [shape: f32[2,8,16], index: 0, kind: input, shape index: {}]   ;;  %s967_s1 = inlined_call_operand.vmem [shape: bf16[24,16], index: 1, kind: input, shape index: {}]   ;;  %s968_s2 = inlined_call_operand.vmem [shape: bf16[48,8], index: 2, kind: input, shape index: {}]   ;;  %s969_s3 = inlined_call_operand.vmem [shape: bf16[8,4], index: 3, kind: input, shape index: {}]   ;;  %s970_s4 = inlined_call_operand.vmem [shape: f32[6,16], index: 4, kind: input, shape index: {}]   ;;  %s971_s5 = inlined_call_operand.hbm [shape: f32[2,4], index: 5, kind: output, shape index: {}]  }
   0x1   :  { %v23_v0 = vld [vmem:[%s966_s0 + $0x8] sm:$0xff]  ;;  %687 = vset.pattern.permute.xlu0 %v739_v2 }
   0x2   :  { %56 = vxpose.xlu1.b32.start.end [1/1] (short) (narrow) %v23_v0, 16  ;;  %v781_v3 = vshrl.u32 %v88_v1, 7 }
   0x3   :  { %10 = vsyncpa [#allocation3], 0  ;;  %v740_v5 = vmov 0.0   ;;  %v741_v9 = vmov 1.0   ;;  %v22_v11 = vld [vmem:[%s966_s0] sm:$0xff]  ;;  %s742_s0 = smov 8  }
   0x4   :  { %v90_v4 = vadd.s32 8, %v781_v3  ;;  %vm91_vm0 = vcmp.gt.s32.totalorder %v781_v3, 0  ;;  %vm109_vm2 = vcmp.lt.s32.totalorder %v781_v3, 1  ;;  %vm132_vm3 = vcmp.lt.s32.totalorder %v781_v3, 7  ;;  %s743_s22 = smov 16   ;;  %s745_s6 = smov 32  }
   0x5   :  { %v648_v6 = vsel %vm91_vm0, 1.0, %v740_v5  ;;  %vm230_vm4 = vcmask 1043456   ;;  %vm201_vm5 = vcmask 64512   ;;  %vm208_vm6 = vcmask 130048   ;;  %s746_s14 = smov 120   ;;  %s639_s25 = sshll.u32 %s971_s5, 4  ;;  %s640_s25 = int_to_ptr.hbm [resolvable:$true] %s639_s25 }
   0x6   :  { %vm98_vm1 = vcmp.lt.s32.totalorder %v90_v4, 15  ;;  %v694_v7 = vpack.i.bf16 1.0, %v648_v6  ;;  %vm225_vm7 = vcmask 195584   ;;  %vm277_vm8 = vcmask 261120  }
   0x7   :  { %v649_v8 = vsel %vm98_vm1, 1.0, %v740_v5  ;;  %vm457_vm0 = vcmask 392192  }
   0x8   :  { %v688_v10 = vpack.i.bf16 %v649_v8, %v741_v9 }
   0xa   :  { %689 = vperm.xlu0 %687, %v688_v10  }
  0x2c   :  { %24 = vxpose.xlu0.b32.start.end [1/1] (short) (narrow) %v22_v11, 16 }
  0x55   :  { %693 = vset.pattern.permute.xlu1 %v739_v2 }
  0x64   :  { %695 = vperm.xlu1 %693, %v694_v7  }
  0x7c   :  { %v690_v17 = vpop.permute.xlu0 %689 }
  0x7d   :  { %v798_v25 = vunpack.i.h.bf16 %v690_v17  ;;  %v800_v26 = vunpack.i.l.bf16 %v690_v17  ;;  %v671_v17 = vld [vmem:[%s967_s1] sm:$0xff] }
  0xa6   :  { %v72_v12 = vpop.trf.xlu1 }
  0xa7   :  { %v107_v13 = vrot.slane %v72_v12, 7  ;;  %v130_v30 = vrot.slane %v72_v12, 1  ;;  %v157_v61 = vpack.c.bf16 %v72_v12, %v72_v12 }
  0xa9   :  { %v179_v2 = vunpack.c.l.b16 %v157_v61 }
  0xae   :  { %v73_v14 = vpop.trf.xlu1 }
  0xaf   :  { %v108_v15 = vrot.slane %v73_v14, 7  ;;  %v131_v60 = vrot.slane %v73_v14, 1  ;;  %v158_v62 = vpack.c.bf16 %v73_v14, %v73_v14 }
  0xb1   :  { %v110_v16 = vsel %vm109_vm2, %v107_v13, %v108_v15  ;;  %v133_v1 = vsel %vm132_vm3, %v130_v30, %v131_v60  ;;  %v180_v4 = vunpack.c.l.b16 %v158_v62 }
  0xb2   :  { %v149_v6 = vmul.f32 %v800_v26, %v133_v1 }
  0xb3   :  { %v182_v7 = vpack.c.b16 %v180_v4, %v179_v2 }
  0xb4   :  { %v161_v9 = vpack.c.bf16 %v149_v6, %v149_v6 }
  0xb6   :  { %v193_v11 = vunpack.c.l.b16 %v161_v9 }
  0xd0   :  { %v40_v18 = vpop.trf.xlu0 }
  0xd1   :  { %v105_v19 = vrot.slane %v40_v18, 7  ;;  %v155_v22 = vpack.c.bf16 %v40_v18, %v40_v18  ;;  %v128_v34 = vrot.slane %v40_v18, 1 }
  0xd3   :  { %v113_v20 = vsel %vm109_vm2, %v108_v15, %v105_v19  ;;  %v177_v35 = vunpack.c.l.b16 %v155_v22  ;;  %v136_v0 = vsel %vm132_vm3, %v131_v60, %v128_v34 }
  0xd4   :  { %v150_v5 = vmul.f32 %v798_v25, %v136_v0 }
  0xd6   :  { %v696_v21 = vpop.permute.xlu1 %695  ;;  %v162_v8 = vpack.c.bf16 %v150_v5, %v150_v5 }
  0xd7   :  { %v793_v23 = vunpack.i.h.bf16 %v696_v21  ;;  %v795_v24 = vunpack.i.l.bf16 %v696_v21 }
  0xd8   :  { %v41_v27 = vpop.trf.xlu0  ;;  %v194_v10 = vunpack.c.l.b16 %v162_v8 }
  0xd9   :  { %v124_v28 = vmul.f32 %v795_v24, %v113_v20  ;;  %v127_v29 = vmul.f32 %v793_v23, %v110_v16  ;;  %v106_v31 = vrot.slane %v41_v27, 7  ;;  %v129_v32 = vrot.slane %v41_v27, 1 }
  0xda   :  { %v156_v33 = vpack.c.bf16 %v41_v27, %v41_v27  ;;  %v196_v12 = vpack.c.b16 %v194_v10, %v193_v11 }
  0xdb   :  { %v151_v36 = vpack.c.bf16 %v124_v28, %v124_v28  ;;  %v154_v37 = vpack.c.bf16 %v127_v29, %v127_v29  ;;  %v111_v38 = vsel %vm109_vm2, %v106_v31, %v107_v13  ;;  %v112_v39 = vsel %vm109_vm2, %v105_v19, %v106_v31  ;;  %v215_v13 = vld [vmem:[%s967_s1 + $0x8] sm:$0xf]  ;;  %s744_s1 = smov 112  }
  0xdc   :  { %v178_v40 = vunpack.c.l.b16 %v156_v33  ;;  %v134_v41 = vsel %vm132_vm3, %v129_v32, %v130_v30  ;;  %v125_v42 = vmul.f32 %v793_v23, %v112_v39  ;;  %v126_v43 = vmul.f32 %v795_v24, %v111_v38 }
  0xdd   :  { %v135_v44 = vsel %vm132_vm3, %v128_v34, %v129_v32  ;;  %v148_v45 = vmul.f32 %v798_v25, %v134_v41  ;;  %v170_v50 = vunpack.c.l.b16 %v154_v37  ;;  %v167_v53 = vunpack.c.l.b16 %v151_v36 }
  0xde   :  { %v181_v46 = vpack.c.b16 %v178_v40, %v177_v35  ;;  %v147_v47 = vmul.f32 %v800_v26, %v135_v44  ;;  %v152_v49 = vpack.c.bf16 %v125_v42, %v125_v42  ;;  %v153_v51 = vpack.c.bf16 %v126_v43, %v126_v43 }
  0xdf   :  { %v160_v48 = vpack.c.bf16 %v148_v45, %v148_v45  ;;  %v221_v14 = vunpack.c.l.b16 %v215_v13 }
  0xe0   :  { %183 = vrot.lane.b32.xlu2 %v181_v46, %s742_s0  ;;  %v159_v52 = vpack.c.bf16 %v147_v47, %v147_v47  ;;  %v168_v54 = vunpack.c.l.b16 %v152_v49  ;;  %v169_v55 = vunpack.c.l.b16 %v153_v51 }
  0xe1   :  { %v192_v57 = vunpack.c.l.b16 %v160_v48  ;;  %v223_v15 = vpack.c.b16 %v221_v14, %v221_v14  ;;  %v699_v14 = vld [vmem:[%s970_s4] ss:$0 sm:$0xff] }
  0xe2   :  { %v191_v56 = vunpack.c.l.b16 %v159_v52  ;;  %v171_v58 = vpack.c.b16 %v168_v54, %v167_v53  ;;  %v172_v59 = vpack.c.b16 %v170_v50, %v169_v55 }
  0xe3   :  { %v232_v16 = vsel %vm230_vm4, %v223_v15, 0 }
  0xe4   :  { %v195_v63 = vpack.c.b16 %v192_v57, %v191_v56  ;;  %240 = vmatpush.bf16.msra.mxu0 %v232_v16  ;;  %v700_v16 = vld [vmem:[%s970_s4 + $0x1] ss:$0 sm:$0xff] }
  0xe8   :  { %197 = vrot.lane.b32.xlu2 %v195_v63, %s743_s22  ;;  %241 = vmatpush.bf16.msra.mxu0 %v671_v17 }
  0xf0   :  { %185 = vrot.lane.b32.xlu2 %v182_v7, %s742_s0 }
  0xf8   :  { %199 = vrot.lane.b32.xlu2 %v196_v12, %s743_s22 }
 0x13a   :  { %v184_v18 = vpop.permute.xlu2 %183 }
 0x13b   :  { %v204_v19 = vsel %vm201_vm5, %v171_v58, %v184_v18 }
 0x142   :  { %v198_v20 = vpop.permute.xlu2 %197 }
 0x143   :  { %v210_v21 = vsel %vm208_vm6, %v204_v19, %v198_v20 }
 0x144   :  { %654 = vmatmul.msk.bf16.vlgmr.msra.gmra.mxu0 %vm225_vm7, %v210_v21 }
 0x14a   :  { %v186_v22 = vpop.permute.xlu2 %185 }
 0x14b   :  { %v207_v27 = vsel %vm201_vm5, %v172_v59, %v186_v22 }
 0x152   :  { %v200_v28 = vpop.permute.xlu2 %199 }
 0x153   :  { %v212_v29 = vsel %vm208_vm6, %v207_v27, %v200_v28 }
 0x154   :  { %655 = vmatmul.msk.bf16.gmra.mxu0 %vm225_vm7, %v212_v29 }
 0x1c1   :  { %v837_v30 = vpop.f32.mrf.mxu0 }
 0x1c2   :  { %v253_v31 = vmul.f32 %v837_v30, %v837_v30 }
 0x1c4   :  { %261 = vrot.lane.b32.xlu2 %v253_v31, %s743_s22 }
 0x1c9   :  { %v245_v32 = vpop.f32.mrf.mxu0 }
 0x1ca   :  { %v254_v33 = vmul.f32 %v245_v32, %v245_v32 }
 0x1cc   :  { %263 = vrot.lane.b32.xlu2 %v254_v33, %s743_s22 }
 0x1d1   :  { %v248_v34 = vpop.f32.mrf.mxu0 }
 0x1d2   :  { %v255_v35 = vmul.f32 %v248_v34, %v248_v34 }
 0x1d4   :  { %265 = vrot.lane.b32.xlu0 %v255_v35, %s743_s22 }
 0x1d9   :  { %v250_v36 = vpop.f32.mrf.mxu0 }
 0x1da   :  { %v256_v37 = vmul.f32 %v250_v36, %v250_v36 }
 0x1dc   :  { %267 = vrot.lane.b32.xlu2 %v256_v37, %s743_s22 }
 0x21e   :  { %v262_v38 = vpop.permute.xlu2 %261 }
 0x21f   :  { %v273_v41 = vsel %vm208_vm6, %v837_v30, %v262_v38 }
 0x220   :  { %v278_v44 = vsel %vm277_vm8, %v273_v41, 0.0 }
 0x226   :  { %v264_v39 = vpop.permute.xlu2 %263 }
 0x227   :  { %v274_v40 = vsel %vm208_vm6, %v245_v32, %v264_v39 }
 0x228   :  { %v279_v42 = vsel %vm277_vm8, %v274_v40, 0.0 }
 0x229   :  { %v280_v46 = vadd.f32 %v279_v42, %v278_v44 }
 0x236   :  { %v268_v43 = vpop.permute.xlu2 %267 }
 0x237   :  { %v276_v47 = vsel %vm208_vm6, %v250_v36, %v268_v43 }
 0x238   :  { %v283_v51 = vsel %vm277_vm8, %v276_v47, 0.0 }
 0x246   :  { %v266_v45 = vpop.permute.xlu0 %265 }
 0x247   :  { %v275_v48 = vsel %vm208_vm6, %v248_v34, %v266_v45 }
 0x248   :  { %v281_v49 = vsel %vm277_vm8, %v275_v48, 0.0 }
 0x249   :  { %v282_v50 = vadd.f32 %v281_v49, %v280_v46 }
 0x24b   :  { %v284_v52 = vadd.f32 %v283_v51, %v282_v50 }
 0x24d   :  { %v285_v53 = vrot.slane %v284_v52, 4 }
 0x24f   :  { %v286_v54 = vadd.f32 %v285_v53, %v284_v52 }
 0x251   :  { %v287_v55 = vrot.slane %v286_v54, 2 }
 0x253   :  { %v288_v56 = vadd.f32 %v287_v55, %v286_v54 }
 0x255   :  { %v289_v57 = vrot.slane %v288_v56, 1 }
 0x257   :  { %v290_v58 = vadd.f32 %v289_v57, %v288_v56 }
 0x259   :  { %v291_v59 = vmul.f32 0.03125, %v290_v58 }
 0x25b   :  { %v292_v60 = vmul.f32 %v291_v59, %v291_v59  ;;  %v299_v10 = vsub.f32 %v837_v30, %v291_v59  ;;  %v300_v11 = vsub.f32 %v245_v32, %v291_v59  ;;  %v301_v12 = vsub.f32 %v248_v34, %v291_v59 }
 0x25c   :  { %v302_v13 = vsub.f32 %v250_v36, %v291_v59 }
 0x25d   :  { %294 = vrot.lane.b32.xlu2 %v292_v60, %s743_s22 }
 0x2b7   :  { %v295_v61 = vpop.permute.xlu2 %294 }
 0x2b8   :  { %v297_v62 = vsub.f32 %v291_v59, %v295_v61 }
 0x2ba   :  { %v298_v63 = vmax.f32 %v297_v62, 0.0 }
 0x2bc   :  { %v303_v0 = vadd.f32 1e-05, %v298_v63 }
 0x2be   :  { %705 = vrsqrt.f32 %v303_v0  ;;  %vm310_vm10 = vweird.f32 %v303_v0 }
 0x2c4   :  { %v706_v1 = vpop.eup %705 }
 0x2c5   :  { %v305_v2 = vmul.f32 %v706_v1, %v303_v0  ;;  %vm311_vm9 = vweird.f32 %v706_v1 }
 0x2c6   :  { %vm312_vm11 = vmor %vm310_vm10, %vm311_vm9 }
 0x2c7   :  { %v306_v4 = vmul.f32 %v706_v1, %v305_v2 }
 0x2c9   :  { %v307_v5 = vmul.f32 0.5, %v306_v4 }
 0x2cb   :  { %v308_v6 = vsub.f32 1.5, %v307_v5 }
 0x2cd   :  { %v309_v7 = vmul.f32 %v706_v1, %v308_v6 }
 0x2cf   :  { %v313_v8 = vsel %vm312_vm11, %v706_v1, %v309_v7 }
 0x2d0   :  { %v314_v9 = vperm.slane %v313_v8, 0 }
 0x2d2   :  { %316 = vrot.lane.b32.xlu2 %v314_v9, %s744_s1 }
 0x32c   :  { %v317_v15 = vpop.permute.xlu2 %316 }
 0x32d   :  { %v319_v17 = vmul.f32 %v317_v15, %v299_v10  ;;  %v320_v18 = vmul.f32 %v317_v15, %v300_v11  ;;  %v321_v19 = vmul.f32 %v317_v15, %v301_v12  ;;  %v322_v20 = vmul.f32 %v317_v15, %v302_v13 }
 0x32f   :  { %v324_v21 = vmul.f32 %v699_v14, %v319_v17  ;;  %v325_v22 = vmul.f32 %v699_v14, %v320_v18  ;;  %v326_v27 = vmul.f32 %v699_v14, %v321_v19  ;;  %v327_v28 = vmul.f32 %v699_v14, %v322_v20 }
 0x331   :  { %v329_v29 = vadd.f32 %v700_v16, %v324_v21  ;;  %v330_v30 = vadd.f32 %v700_v16, %v325_v22  ;;  %v331_v31 = vadd.f32 %v700_v16, %v326_v27  ;;  %v332_v32 = vadd.f32 %v700_v16, %v327_v28 }
 0x333   :  { %vm335_vm12 = vcmp.gt.f32.partialorder %v331_v31, 0.0  ;;  %vm336_vm13 = vcmp.gt.f32.partialorder %v332_v32, 0.0  ;;  %v339_v33 = vmul.f32 0.1, %v331_v31  ;;  %v340_v34 = vmul.f32 0.1, %v332_v32 }
 0x334   :  { %vm333_vm14 = vcmp.gt.f32.partialorder %v329_v29, 0.0  ;;  %vm334_vm15 = vcmp.gt.f32.partialorder %v330_v30, 0.0  ;;  %v337_v35 = vmul.f32 0.1, %v329_v29  ;;  %v338_v36 = vmul.f32 0.1, %v330_v30 }
 0x335   :  { %v343_v37 = vsel %vm335_vm12, %v331_v31, %v339_v33  ;;  %v344_v38 = vsel %vm336_vm13, %v332_v32, %v340_v34  ;;  %v674_v33 = vld [vmem:[%s968_s2 + $0x10] sm:$0xff] }
 0x336   :  { %v351_v39 = vrot.slane %v344_v38, 7  ;;  %v363_v40 = vrot.slane %v344_v38, 1  ;;  %v378_v41 = vpack.c.bf16 %v343_v37, %v343_v37  ;;  %v379_v42 = vpack.c.bf16 %v344_v38, %v344_v38  ;;  %675 = vmatpush.bf16.msra.mxu3 %v674_v33  ;;  %467 = vmatpush.bf16.msra.mxu1 %v674_v33 }
 0x337   :  { %v350_v43 = vrot.slane %v343_v37, 7  ;;  %v362_v44 = vrot.slane %v343_v37, 1  ;;  %v341_v45 = vsel %vm333_vm14, %v329_v29, %v337_v35  ;;  %v342_v46 = vsel %vm334_vm15, %v330_v30, %v338_v36 }
 0x338   :  { %v400_v47 = vunpack.c.l.b16 %v378_v41  ;;  %v401_v48 = vunpack.c.l.b16 %v379_v42  ;;  %v349_v49 = vrot.slane %v342_v46, 7  ;;  %v376_v50 = vpack.c.bf16 %v341_v45, %v341_v45  ;;  %v701_v42 = vld [vmem:[%s970_s4 + $0x2] ss:$0 sm:$0xff] }
 0x339   :  { %v377_v51 = vpack.c.bf16 %v342_v46, %v342_v46  ;;  %v360_v52 = vrot.slane %v341_v45, 1  ;;  %v348_v54 = vrot.slane %v341_v45, 7  ;;  %v352_v55 = vsel %vm109_vm2, %v350_v43, %v351_v39 }
 0x33a   :  { %v403_v53 = vpack.c.b16 %v401_v48, %v400_v47  ;;  %v364_v56 = vsel %vm132_vm3, %v362_v44, %v363_v40  ;;  %v353_v58 = vsel %vm109_vm2, %v349_v49, %v350_v43  ;;  %v398_v59 = vunpack.c.l.b16 %v376_v50 }
 0x33b   :  { %v367_v57 = vsel %vm132_vm3, %v363_v40, %v360_v52  ;;  %v399_v60 = vunpack.c.l.b16 %v377_v51  ;;  %v358_v61 = vmul.f32 %v795_v24, %v353_v58  ;;  %v370_v62 = vmul.f32 %v800_v26, %v364_v56 }
 0x33c   :  { %406 = vrot.lane.b32.xlu2 %v403_v53, %s743_s22  ;;  %v371_v63 = vmul.f32 %v798_v25, %v367_v57  ;;  %v359_v0 = vmul.f32 %v793_v23, %v352_v55  ;;  %v354_v1 = vsel %vm109_vm2, %v348_v54, %v349_v49  ;;  %v361_v2 = vrot.slane %v342_v46, 1 }
 0x33d   :  { %v374_v4 = vpack.c.bf16 %v358_v61, %v358_v61  ;;  %v355_v5 = vsel %vm109_vm2, %v351_v39, %v348_v54  ;;  %v402_v8 = vpack.c.b16 %v399_v60, %v398_v59  ;;  %v357_v10 = vmul.f32 %v793_v23, %v354_v1 }
 0x33e   :  { %v375_v6 = vpack.c.bf16 %v359_v0, %v359_v0  ;;  %v356_v7 = vmul.f32 %v795_v24, %v355_v5  ;;  %v382_v11 = vpack.c.bf16 %v370_v62, %v370_v62  ;;  %v383_v12 = vpack.c.bf16 %v371_v63, %v371_v63 }
 0x33f   :  { %v390_v9 = vunpack.c.l.b16 %v374_v4  ;;  %v365_v15 = vsel %vm132_vm3, %v361_v2, %v362_v44  ;;  %v366_v16 = vsel %vm132_vm3, %v360_v52, %v361_v2  ;;  %v373_v17 = vpack.c.bf16 %v357_v10, %v357_v10 }
 0x340   :  { %v391_v13 = vunpack.c.l.b16 %v375_v6  ;;  %v372_v14 = vpack.c.bf16 %v356_v7, %v356_v7  ;;  %v414_v20 = vunpack.c.l.b16 %v382_v11  ;;  %v415_v21 = vunpack.c.l.b16 %v383_v12 }
 0x341   :  { %v389_v24 = vunpack.c.l.b16 %v373_v17  ;;  %v368_v23 = vmul.f32 %v800_v26, %v366_v16  ;;  %v369_v22 = vmul.f32 %v798_v25, %v365_v15  ;;  %v673_v25 = vld [vmem:[%s968_s2 + $0x8] sm:$0xff]  ;;  %v672_v26 = vld [vmem:[%s968_s2] sm:$0xff] }
 0x342   :  { %v393_v18 = vpack.c.b16 %v391_v13, %v390_v9  ;;  %v388_v19 = vunpack.c.l.b16 %v372_v14  ;;  %v417_v28 = vpack.c.b16 %v415_v21, %v414_v20  ;;  %676 = vmatpush.bf16.msra.mxu3 %v673_v25  ;;  %468 = vmatpush.bf16.msra.mxu1 %v673_v25  ;;  %v702_v25 = vld [vmem:[%s970_s4 + $0x3] ss:$0 sm:$0xff] }
 0x343   :  { %v380_v29 = vpack.c.bf16 %v368_v23, %v368_v23  ;;  %v381_v30 = vpack.c.bf16 %v369_v22, %v369_v22 }
 0x344   :  { %404 = vrot.lane.b32.xlu2 %v402_v8, %s743_s22  ;;  %v392_v27 = vpack.c.b16 %v389_v24, %v388_v19 }
 0x345   :  { %v412_v3 = vunpack.c.l.b16 %v380_v29  ;;  %v413_v31 = vunpack.c.l.b16 %v381_v30  ;;  %v591_v29 = vld [vmem:[%s969_s3] sm:$0xf] }
 0x346   :  { %677 = vmatpush.bf16.msra.mxu3 %v672_v26  ;;  %469 = vmatpush.bf16.msra.mxu1 %v672_v26  ;;  %v604_v30 = vsel %vm230_vm4, %v591_v29, 0  ;;  %vm597_vm4 = vcmask 1041409  }
 0x347   :  { %v416_v32 = vpack.c.b16 %v413_v31, %v412_v3  ;;  %613 = vmatpush.bf16.msra.mxu2 %v604_v30 }
 0x34c   :  { %420 = vrot.lane.b32.xlu2 %v417_v28, %s745_s6 }
 0x354   :  { %418 = vrot.lane.b32.xlu2 %v416_v32, %s745_s6 }
 0x396   :  { %v407_v34 = vpop.permute.xlu2 %406 }
 0x397   :  { %v427_v36 = vsel %vm208_vm6, %v393_v18, %v407_v34  ;;  %v703_v34 = vld [vmem:[%s970_s4 + $0x4] ss:$0 sm:$0xff] }
 0x39e   :  { %v405_v35 = vpop.permute.xlu2 %404 }
 0x39f   :  { %v424_v39 = vsel %vm208_vm6, %v392_v27, %v405_v35 }
 0x3a6   :  { %v421_v37 = vpop.permute.xlu2 %420 }
 0x3a7   :  { %v431_v38 = vsel %vm277_vm8, %v427_v36, %v421_v37 }
 0x3a8   :  { %669 = vmatmul.msk.bf16.vlgmr.msra.gmra.mxu3 %vm457_vm0, %v431_v38 }
 0x3ae   :  { %v419_v40 = vpop.permute.xlu2 %418 }
 0x3af   :  { %v429_v41 = vsel %vm277_vm8, %v424_v39, %v419_v40 }
 0x3b0   :  { %668 = vmatmul.msk.bf16.vlgmr.msra.gmra.mxu1 %vm457_vm0, %v429_v41 }
 0x42b   :  { %v476_v45 = vpop.f32.mrf.mxu3 }
 0x42c   :  { %v909_v47 = vadd.f32 %v701_v42, %v476_v45 }
 0x42d   :  { %v471_v43 = vpop.f32.mrf.mxu1 }
 0x42e   :  { %v904_v44 = vadd.f32 %v701_v42, %v471_v43  ;;  %v483_v51 = vmul.f32 %v909_v47, %v909_v47 }
 0x430   :  { %v481_v46 = vmul.f32 %v904_v44, %v904_v44 }
 0x432   :  { %489 = vrot.lane.b32.xlu2 %v481_v46, %s742_s0 }
 0x433   :  { %v478_v52 = vpop.f32.mrf.mxu3 }
 0x434   :  { %v919_v53 = vadd.f32 %v701_v42, %v478_v52 }
 0x435   :  { %v473_v48 = vpop.f32.mrf.mxu1 }
 0x436   :  { %v911_v49 = vadd.f32 %v701_v42, %v473_v48  ;;  %v484_v54 = vmul.f32 %v919_v53, %v919_v53 }
 0x438   :  { %v482_v50 = vmul.f32 %v911_v49, %v911_v49 }
 0x43a   :  { %491 = vrot.lane.b32.xlu1 %v482_v50, %s742_s0  ;;  %493 = vrot.lane.b32.xlu2 %v483_v51, %s742_s0 }
 0x442   :  { %495 = vrot.lane.b32.xlu1 %v484_v54, %s742_s0 }
 0x48c   :  { %v490_v55 = vpop.permute.xlu2 %489 }
 0x48d   :  { %v501_v57 = vsel %vm201_vm5, %v904_v44, %v490_v55 }
 0x48e   :  { %v505_v61 = vsel %vm208_vm6, %v501_v57, 0.0 }
 0x494   :  { %v494_v59 = vpop.permute.xlu2 %493 }
 0x495   :  { %v503_v62 = vsel %vm201_vm5, %v909_v47, %v494_v59 }
 0x496   :  { %v508_v0 = vsel %vm208_vm6, %v503_v62, 0.0 }
 0x4ac   :  { %v492_v56 = vpop.permute.xlu1 %491 }
 0x4ad   :  { %v502_v58 = vsel %vm201_vm5, %v911_v49, %v492_v56 }
 0x4ae   :  { %v506_v60 = vsel %vm208_vm6, %v502_v58, 0.0 }
 0x4af   :  { %v507_v63 = vadd.f32 %v506_v60, %v505_v61 }
 0x4b1   :  { %v509_v4 = vadd.f32 %v508_v0, %v507_v63 }
 0x4b4   :  { %v496_v1 = vpop.permute.xlu1 %495 }
 0x4b5   :  { %v504_v2 = vsel %vm201_vm5, %v919_v53, %v496_v1 }
 0x4b6   :  { %v510_v5 = vsel %vm208_vm6, %v504_v2, 0.0 }
 0x4b7   :  { %v511_v6 = vadd.f32 %v510_v5, %v509_v4 }
 0x4b9   :  { %v512_v7 = vrot.slane %v511_v6, 4 }
 0x4bb   :  { %v513_v8 = vadd.f32 %v512_v7, %v511_v6 }
 0x4bd   :  { %v514_v9 = vrot.slane %v513_v8, 2 }
 0x4bf   :  { %v515_v10 = vadd.f32 %v514_v9, %v513_v8 }
 0x4c1   :  { %v516_v11 = vrot.slane %v515_v10, 1 }
 0x4c3   :  { %v517_v12 = vadd.f32 %v516_v11, %v515_v10 }
 0x4c5   :  { %v518_v13 = vmul.f32 0.03125, %v517_v12 }
 0x4c7   :  { %v519_v14 = vmul.f32 %v518_v13, %v518_v13  ;;  %v526_v3 = vsub.f32 %v904_v44, %v518_v13  ;;  %v527_v31 = vsub.f32 %v911_v49, %v518_v13  ;;  %v528_v32 = vsub.f32 %v909_v47, %v518_v13 }
 0x4c8   :  { %v529_v33 = vsub.f32 %v919_v53, %v518_v13 }
 0x4c9   :  { %521 = vrot.lane.b32.xlu2 %v519_v14, %s742_s0  ;;  %s747_s0 = smov [#allocation2]  }
 0x4ca   :  { %s637_s22 = sshll.u32 %s747_s0, 4  ;;  %s638_s22 = int_to_ptr.vmem [resolvable:$true] %s637_s22 }
 0x523   :  { %v522_v15 = vpop.permute.xlu2 %521 }
 0x524   :  { %v524_v16 = vsub.f32 %v518_v13, %v522_v15 }
 0x526   :  { %v525_v17 = vmax.f32 %v524_v16, 0.0 }
 0x528   :  { %v530_v18 = vadd.f32 1e-05, %v525_v17 }
 0x52a   :  { %707 = vrsqrt.f32 %v530_v18  ;;  %vm537_vm2 = vweird.f32 %v530_v18 }
 0x530   :  { %v708_v19 = vpop.eup %707 }
 0x531   :  { %v532_v24 = vmul.f32 %v708_v19, %v530_v18  ;;  %vm538_vm1 = vweird.f32 %v708_v19  ;;  %v704_v18 = vld [vmem:[%s970_s4 + $0x5] ss:$0 sm:$0xff] }
 0x532   :  { %vm539_vm3 = vmor %vm537_vm2, %vm538_vm1 }
 0x533   :  { %v533_v20 = vmul.f32 %v708_v19, %v532_v24 }
 0x535   :  { %v534_v21 = vmul.f32 0.5, %v533_v20 }
 0x537   :  { %v535_v23 = vsub.f32 1.5, %v534_v21 }
 0x539   :  { %v536_v22 = vmul.f32 %v708_v19, %v535_v23 }
 0x53b   :  { %v540_v27 = vsel %vm539_vm3, %v708_v19, %v536_v22 }
 0x53c   :  { %v541_v28 = vperm.slane %v540_v27, 0 }
 0x53e   :  { %543 = vrot.lane.b32.xlu1 %v541_v28, %s746_s14 }
 0x5b0   :  { %v544_v26 = vpop.permute.xlu1 %543 }
 0x5b1   :  { %v546_v35 = vmul.f32 %v544_v26, %v526_v3  ;;  %v547_v36 = vmul.f32 %v544_v26, %v527_v31  ;;  %v548_v37 = vmul.f32 %v544_v26, %v528_v32  ;;  %v549_v38 = vmul.f32 %v544_v26, %v529_v33 }
 0x5b3   :  { %v551_v39 = vmul.f32 %v702_v25, %v546_v35  ;;  %v552_v40 = vmul.f32 %v702_v25, %v547_v36  ;;  %v553_v41 = vmul.f32 %v702_v25, %v548_v37  ;;  %v554_v42 = vmul.f32 %v702_v25, %v549_v38 }
 0x5b5   :  { %v556_v43 = vadd.f32 %v703_v34, %v551_v39  ;;  %v557_v45 = vadd.f32 %v703_v34, %v552_v40  ;;  %v558_v46 = vadd.f32 %v703_v34, %v553_v41  ;;  %v559_v48 = vadd.f32 %v703_v34, %v554_v42 }
 0x5b7   :  { %v560_v50 = vadd.f32 %v556_v43, %v904_v44  ;;  %v561_v51 = vadd.f32 %v557_v45, %v911_v49  ;;  %v562_v52 = vadd.f32 %v558_v46, %v909_v47  ;;  %v563_v54 = vadd.f32 %v559_v48, %v919_v53 }
 0x5b9   :  { %v564_v55 = vmax.f32 %v560_v50, 0.0  ;;  %v565_v56 = vmax.f32 %v561_v51, 0.0  ;;  %v566_v57 = vmax.f32 %v562_v52, 0.0  ;;  %v567_v58 = vmax.f32 %v563_v54, 0.0 }
 0x5bb   :  { %v568_v59 = vsel %vm201_vm5, %v564_v55, 0.0  ;;  %v569_v60 = vsel %vm201_vm5, %v565_v56, 0.0  ;;  %v577_v61 = vsel %vm201_vm5, %v566_v57, 0.0  ;;  %v578_v62 = vsel %vm201_vm5, %v567_v58, 0.0 }
 0x5bc   :  { %v570_v63 = vadd.f32 %v569_v60, %v568_v59  ;;  %v579_v44 = vadd.f32 %v578_v62, %v577_v61 }
 0x5be   :  { %v571_v0 = vrot.slane %v570_v63, 4  ;;  %v580_v49 = vrot.slane %v579_v44, 4 }
 0x5c0   :  { %v572_v1 = vadd.f32 %v571_v0, %v570_v63  ;;  %v581_v47 = vadd.f32 %v580_v49, %v579_v44 }
 0x5c2   :  { %v573_v2 = vrot.slane %v572_v1, 2  ;;  %v582_v53 = vrot.slane %v581_v47, 2 }
 0x5c4   :  { %v574_v4 = vadd.f32 %v573_v2, %v572_v1  ;;  %v583_v5 = vadd.f32 %v582_v53, %v581_v47 }
 0x5c6   :  { %v575_v6 = vrot.slane %v574_v4, 1  ;;  %v584_v7 = vrot.slane %v583_v5, 1 }
 0x5c8   :  { %v576_v8 = vadd.f32 %v575_v6, %v574_v4  ;;  %v585_v9 = vadd.f32 %v584_v7, %v583_v5 }
 0x5ca   :  { %v586_v10 = vmul.f32 0.0625, %v576_v8  ;;  %v587_v11 = vmul.f32 0.0625, %v585_v9 }
 0x5cc   :  { %v589_v12 = vpack.c.bf16 %v586_v10, %v586_v10  ;;  %v590_v13 = vpack.c.bf16 %v587_v11, %v587_v11 }
 0x5ce   :  { %v595_v14 = vunpack.c.l.b16 %v589_v12  ;;  %v596_v15 = vunpack.c.l.b16 %v590_v13 }
 0x5d0   :  { %v598_v16 = vsel %vm597_vm4, %v596_v15, %v595_v14 }
 0x5d1   :  { %v599_v17 = vpack.c.b16 %v598_v16, %v598_v16 }
 0x5d3   :  { %670 = vmatmul.msk.bf16.vlgmr.msra.gmra.mxu2 %vm201_vm5, %v599_v17  ;;  %vm630_vm5 = vcmask 25600  }
 0x656   :  { %v615_v19 = vpop.f32.mrf.mxu2 }
 0x657   :  { %v616_v24 = vadd.f32 %v704_v18, %v615_v19 }
 0x659   :  { %v620_v20 = vand.u32 2147483647, %v616_v24  ;;  %v619_v30 = vmax.f32 %v616_v24, 0.0  ;;  %vm628_vm6 = vcmp.gt.f32.partialorder %v616_v24, 20.0 }
 0x65b   :  { %v621_v21 = vsub.f32 0.0, %v620_v20 }
 0x65d   :  { %v622_v23 = vmul.f32 1.442695, %v621_v21 }
 0x65e   :  { %v617_v22 = vpop.f32.mrf.mxu2 }
 0x65f   :  { %709 = vpow2.f32 %v622_v23 }
 0x665   :  { %v710_v27 = vpop.eup %709 }
 0x666   :  { %v624_v28 = vadd.f32 1.0, %v710_v27 }
 0x668   :  { %711 = vlog2.f32 %v624_v28 }
 0x66e   :  { %v712_v29 = vpop.eup %711 }
 0x66f   :  { %v626_v3 = vmul.f32 0.6931472, %v712_v29 }
 0x671   :  { %v627_v31 = vadd.f32 %v626_v3, %v619_v30 }
 0x673   :  { %v629_v32 = vsel %vm628_vm6, %v616_v24, %v627_v31 }
 0x674   :  { %631 = vst.msk [vmem:[#allocation2] sm:$0x3] %vm630_vm5, %v629_v32 }
 0x675   :  { %642 = dma.vmem_to_hbm [thread:$0]  %s638_s22, 32, %s640_s25, [#allocation3]  }
 0x676   :  { %737 = dma.done.wait [#allocation3], 32  }
 0x677   :  { %738 = vsyncadd [#allocation3], 4294967264 }
 0x678   :  { %647 = vsyncpa [#allocation3], 1 }

</bundles_post_ra>
